<compile_context>
chip_gen: v6e
topology: v6e:2x2x1
jax: 0.10.0
libtpu: 0.0.40
codegen_flags: <defaults>
</compile_context>

<pallas_src>
import functools

import numpy as np
import jax
import jax.numpy as jnp
from jax.experimental import pallas as pl
from jax.experimental.pallas import tpu as pltpu

GAMMA = 0.1
BN_EPS = 1e-5
_VMEM_LIMIT = 64 * 1024 * 1024


def _smoothstep(zn):
    g = GAMMA
    s = (-2.0 / g ** 3) * zn * zn * zn + (3.0 / (2.0 * g)) * zn + 0.5
    s = jnp.where(zn <= -g / 2.0, 0.0, s)
    s = jnp.where(zn >= g / 2.0, 1.0, s)
    return s


# ----------------------------------------------------------------------------
# Pass 1: full-batch BatchNorm statistics (per decision-node column).
# Grid: batch tiles, "arbitrary" (the outputs are accumulators resident in
# VMEM across the whole sweep, written back once at the end).
# ----------------------------------------------------------------------------
def _stats_kernel(x_ref, w_ref, sum_ref, sq_ref):
    @pl.when(pl.program_id(0) == 0)
    def _():
        sum_ref[...] = jnp.zeros_like(sum_ref)
        sq_ref[...] = jnp.zeros_like(sq_ref)

    x = x_ref[...].astype(w_ref.dtype)          # bf16 only on the MXU operand
    z = jnp.dot(x, w_ref[...], preferred_element_type=jnp.float32)  # (Bt, TL)
    sum_ref[...] += jnp.sum(z, axis=0, keepdims=True)
    sq_ref[...] += jnp.sum(z * z, axis=0, keepdims=True)


# ----------------------------------------------------------------------------
# Pass 2: routing + leaf aggregation.
# Grid: (tree_groups, batch_tiles), both "parallel" (megacore-friendly).
#   w_ref    : (depth, F, TL_g) BN-scaled, node->leaf column-expanded weights
#   c_ref    : (depth, TL_g)    BN shift, same column expansion
#   bits_ref : (depth, TL_g)    0 = left child (use s), 1 = right (use 1 - s)
#   pi_ref   : (1, TL_g)        leaf values, already divided by n_estimators
#   out_ref  : (Bt, 1)          per-(tree-group, batch-tile) partial sum
# ----------------------------------------------------------------------------
def _forward_kernel(x_ref, w_ref, c_ref, bits_ref, pi_ref, out_ref, *, depth):
    x = x_ref[...].astype(w_ref.dtype)
    mu = None
    for lvl in range(depth):
        # One routing level at a time: never materialize (Bt, depth*TL).
        z = jnp.dot(x, w_ref[lvl], preferred_element_type=jnp.float32)
        zn = z + c_ref[lvl:lvl + 1, :]                       # BN pre-folded
        s = _smoothstep(zn)
        blv = bits_ref[lvl:lvl + 1, :]
        r = blv + (1.0 - 2.0 * blv) * s                      # s or 1 - s
        mu = r if mu is None else mu * r                     # (Bt, TL_g)
    # Leaf values + sum over the trees of this group: VPU multiply + lane
    # reduce (no N=1 MXU matmul; 1/n_estimators already folded into pi).
    out_ref[...] = jnp.sum(mu * pi_ref[...], axis=-1, keepdims=True)


# ----------------------------------------------------------------------------
# Static routing structure: per-level node index and branch bit per leaf col.
# ----------------------------------------------------------------------------
def _routing_tables(depth, n_trees):
    L = 2 ** depth
    TL = n_trees * L
    idx = np.zeros((depth, TL), np.int32)
    bits = np.zeros((depth, TL), np.float32)
    for lvl in range(depth):
        for t in range(n_trees):
            base = t * L
            for leaf in range(L):
                node = 2 ** lvl + (leaf >> (depth - lvl))    # heap index
                bit = (leaf >> (depth - 1 - lvl)) & 1        # 0=left 1=right
                idx[lvl, base + leaf] = base + node
                bits[lvl, base + leaf] = float(bit)
    return idx, bits


def _pick_batch_block(batch, target=256):
    if batch <= target:
        return batch
    for cand in (target, 128, 64, 32, 16, 8):
        if batch % cand == 0:
            return cand
    return batch


def forest_forward(X, params, depth, *, block_b=None, n_tree_groups=None,
                   use_bf16=False):
    mask, wT, b, bnw, bnb, pi = params
    del b  # exactly cancelled by training-mode BatchNorm mean subtraction
    T, F, _ = mask.shape
    L = 2 ** depth
    TL = T * L
    B = X.shape[0]
    X = X.astype(jnp.float32)

    if block_b is None:
        # 256 is a good default for v6e/v7x; 128 already saturates v5e's MXU.
        block_b = _pick_batch_block(B)
    if B % block_b != 0:
        raise ValueError("batch must be divisible by the batch tile")
    n_bt = B // block_b

    if n_tree_groups is None:
        # one tree group per TensorCore (v7x) when the lane width allows it
        n_tree_groups = 2 if TL % 256 == 0 else 1
    assert TL % n_tree_groups == 0
    tl_g = TL // n_tree_groups
    assert tl_g % 128 == 0 or n_tree_groups == 1

    mm_dtype = jnp.bfloat16 if use_bf16 else jnp.float32
    hi = jax.lax.Precision.HIGHEST

    # Fold the 0/1 feature-selection mask into the decision weight (exact).
    w_all = jnp.einsum("tfu,tul->tfl", mask, wT, precision=hi)       # (T,F,L)
    w_all = jnp.transpose(w_all, (1, 0, 2)).reshape(F, TL)           # (F,TL)

    # ---- pass 1: full-batch BN statistics (exact under batch tiling) ----
    zsum, zsq = pl.pallas_call(
        _stats_kernel,
        out_shape=(jax.ShapeDtypeStruct((1, TL), jnp.float32),
                   jax.ShapeDtypeStruct((1, TL), jnp.float32)),
        grid=(n_bt,),
        in_specs=[
            pl.BlockSpec((block_b, F), lambda i: (i, 0)),
            pl.BlockSpec((F, TL), lambda i: (0, 0)),
        ],
        out_specs=(pl.BlockSpec((1, TL), lambda i: (0, 0)),
                   pl.BlockSpec((1, TL), lambda i: (0, 0))),
        compiler_params=pltpu.CompilerParams(
            dimension_semantics=("arbitrary",),
            vmem_limit_bytes=_VMEM_LIMIT),
    )(X, w_all.astype(mm_dtype))

    mean = (zsum / B).reshape(TL)
    var = jnp.maximum((zsq / B).reshape(TL) - mean * mean, 0.0)  # biased var
    scale = bnw.reshape(TL) * jax.lax.rsqrt(var + BN_EPS)
    shift = bnb.reshape(TL) - mean * scale

    # ---- fold BN + node->leaf column expansion into per-level weights ----
    idx_np, bits_np = _routing_tables(depth, T)
    idx = jnp.asarray(idx_np)                                  # (depth, TL)
    w_exp = w_all[:, idx] * scale[idx]                         # (F, depth, TL)
    w_exp = jnp.transpose(w_exp, (1, 0, 2)).astype(mm_dtype)   # (depth, F, TL)
    c_exp = shift[idx]                                         # (depth, TL)
    bits = jnp.asarray(bits_np)                                # (depth, TL)
    pi_row = (pi.reshape(TL) / T).reshape(1, TL)               # forest mean

    # ---- pass 2: routing + leaf aggregation ----
    kernel = functools.partial(_forward_kernel, depth=depth)
    partial_out = pl.pallas_call(
        kernel,
        out_shape=jax.ShapeDtypeStruct((n_tree_groups, B, 1), jnp.float32),
        grid=(n_tree_groups, n_bt),
        in_specs=[
            pl.BlockSpec((block_b, F), lambda g, i: (i, 0)),          # X tile
            pl.BlockSpec((depth, F, tl_g), lambda g, i: (0, 0, g)),   # W_s
            pl.BlockSpec((depth, tl_g), lambda g, i: (0, g)),         # BN shift
            pl.BlockSpec((depth, tl_g), lambda g, i: (0, g)),         # bits
            pl.BlockSpec((1, tl_g), lambda g, i: (0, g)),             # pi row
        ],
        out_specs=pl.BlockSpec((None, block_b, 1), lambda g, i: (g, i, 0)),
        compiler_params=pltpu.CompilerParams(
            dimension_semantics=("parallel", "parallel"),
            vmem_limit_bytes=_VMEM_LIMIT),
    )(X, w_exp, c_exp, bits, pi_row)

    return jnp.sum(partial_out, axis=0)                        # (B, 1)


# ----------------------------------------------------------------------------
# Deterministic parameter initialization (mirrors the module __init__ shapes)
# ----------------------------------------------------------------------------
def init_params(key, n_estimators, n_features, depth, used_features_rate=0.7):
    L = 2 ** depth
    U = int(n_features * used_features_rate)
    eye = jnp.eye(n_features, dtype=jnp.float32)
    masks, wTs, bs, bnws, bnbs, pis = [], [], [], [], [], []
    for _ in range(n_estimators):
        key, k1, k2, k3, k4 = jax.random.split(key, 5)
        idx = jnp.sort(jax.random.permutation(k1, n_features)[:U])
        masks.append(eye[idx].T)                                   # (F, U)
        bound = 1.0 / np.sqrt(U)
        w = jax.random.uniform(k2, (L, U), jnp.float32, -bound, bound)
        wTs.append(w.T)                                            # (U, L)
        bs.append(jax.random.uniform(k3, (1, L), jnp.float32, -bound, bound))
        bnws.append(jnp.ones((1, L), jnp.float32))                 # BN weight
        bnbs.append(jnp.zeros((1, L), jnp.float32))                # BN bias
        pis.append(jax.random.uniform(k4, (L, 1), jnp.float32))    # torch.rand
    stack = lambda xs: jnp.stack(xs, axis=0)
    return tuple(stack(xs) for xs in (masks, wTs, bs, bnws, bnbs, pis))


# ----------------------------------------------------------------------------
# Pure-JAX reference (literal port of the PyTorch forward, for verification)
# ----------------------------------------------------------------------------
def _tree_forward_ref(X, mask, wT, b, bnw, bnb, pi, depth):
    hi = jax.lax.Precision.HIGHEST
    xu = jnp.dot(X, mask, precision=hi)
    z = jnp.dot(xu, wT, precision=hi) + b
    mean = jnp.mean(z, axis=0, keepdims=True)
    var = jnp.mean((z - mean) ** 2, axis=0, keepdims=True)
    zn = (z - mean) / jnp.sqrt(var + BN_EPS) * bnw + bnb
    g = GAMMA
    s = (-2.0 / g ** 3) * zn ** 3 + (3.0 / (2.0 * g)) * zn + 0.5
    s = jnp.where(zn <= -g / 2.0, 0.0, s)
    s = jnp.where(zn >= g / 2.0, 1.0, s)
    decisions = jnp.stack([s, 1.0 - s], axis=2)                    # (B, L, 2)
    B = X.shape[0]
    mu = jnp.ones((B, 1, 1), jnp.float32)
    begin, end = 1, 2
    for level in range(depth):
        mu = mu.reshape(B, -1, 1)
        mu = jnp.tile(mu, (1, 1, 2))
        mu = mu * decisions[:, begin:end, :]
        begin = end
        end = begin + 2 ** (level + 1)
    mu = mu.reshape(B, 2 ** depth)
    return jnp.dot(mu, pi, precision=hi)


def forest_forward_ref(X, params, depth):
    mask, wT, b, bnw, bnb, pi = params
    T = mask.shape[0]
    out = jnp.zeros((X.shape[0], 1), jnp.float32)
    for t in range(T):
        out = out + _tree_forward_ref(X, mask[t], wT[t], b[t], bnw[t],
                                      bnb[t], pi[t], depth)
    return out / T


if __name__ == "__main__":
    B, F = 16, 16
    n_estimators, depth, used_rate = 8, 5, 0.7    # TL = 8 * 32 = 256

    key = jax.random.PRNGKey(0)
    key, kx, kp = jax.random.split(key, 3)
    X = jax.random.normal(kx, (B, F), jnp.float32)
    params = init_params(kp, n_estimators, F, depth, used_rate)

    # f32 path; block_b=8 exercises batch tiling (2 tiles) + tree-group split.
    out = forest_forward(X, params, depth, block_b=8)
    jax.block_until_ready(out)

    ref = forest_forward_ref(X, params, depth)
    np.testing.assert_allclose(np.asarray(out), np.asarray(ref),
                               rtol=2e-3, atol=2e-3)

    # bf16 MXU-operand path (v6e/v7x); element-wise math stays f32.  Accuracy
    # near the smoothstep thresholds should be validated per-application, so
    # only shape/finiteness is checked here.
    out_bf16 = forest_forward(X, params, depth, block_b=8, use_bf16=True)
    jax.block_until_ready(out_bf16)
    assert out_bf16.shape == (B, 1)
    assert bool(jnp.all(jnp.isfinite(out_bf16)))

    print("KERNEL_OK")
</pallas_src>

<mosaic_0001>
module attributes {stable_mosaic.version = 11 : i64} {
  func.func @_stats_kernel(%arg0: i32, %arg1: memref<8x16xf32, #tpu.memory_space<vmem>>, %arg2: memref<16x256xf32, #tpu.memory_space<vmem>>, %arg3: memref<1x256xf32, #tpu.memory_space<vmem>>, %arg4: memref<1x256xf32, #tpu.memory_space<vmem>>) attributes {dimension_semantics = [#tpu.dimension_semantics<arbitrary>], iteration_bounds = array<i64: 2>, scalar_prefetch = 0 : i64, scratch_operands = 0 : i64, tpu.core_type = #tpu.core_type<tc>, window_params = [{transform_indices = @transform_0, window_bounds = array<i64: 8, 16>}, {pipeline_mode = #tpu.pipeline_mode<synchronous>, transform_indices = @transform_1, window_bounds = array<i64: 16, 256>}, {pipeline_mode = #tpu.pipeline_mode<synchronous>, transform_indices = @transform_2, window_bounds = array<i64: 1, 256>}, {pipeline_mode = #tpu.pipeline_mode<synchronous>, transform_indices = @transform_3, window_bounds = array<i64: 1, 256>}]} {
    %c0_i32 = arith.constant 0 : i32
    %0 = arith.cmpi eq, %arg0, %c0_i32 : i32
    %1 = arith.extui %0 : i1 to i32
    %c0_i32_0 = arith.constant 0 : i32
    %2 = arith.cmpi ne, %1, %c0_i32_0 : i32
    scf.if %2 {
      %cst_14 = arith.constant 0.000000e+00 : f32
      %17 = vector.broadcast %cst_14 : f32 to vector<1x256xf32>
      %c0_15 = arith.constant 0 : index
      %c0_16 = arith.constant 0 : index
      %18 = vector.load %arg3[%c0_15, %c0_16] : memref<1x256xf32, #tpu.memory_space<vmem>>, vector<1x256xf32>
      tpu.vector_store %arg3[%c0_15, %c0_16], %17 {strides = array<i32>} : memref<1x256xf32, #tpu.memory_space<vmem>>, vector<1x256xf32>,
      %cst_17 = arith.constant 0.000000e+00 : f32
      %19 = vector.broadcast %cst_17 : f32 to vector<1x256xf32>
      %c0_18 = arith.constant 0 : index
      %c0_19 = arith.constant 0 : index
      %20 = vector.load %arg4[%c0_18, %c0_19] : memref<1x256xf32, #tpu.memory_space<vmem>>, vector<1x256xf32>
      tpu.vector_store %arg4[%c0_18, %c0_19], %19 {strides = array<i32>} : memref<1x256xf32, #tpu.memory_space<vmem>>, vector<1x256xf32>,
    } else {
    }
    %c0 = arith.constant 0 : index
    %c0_1 = arith.constant 0 : index
    %3 = vector.load %arg1[%c0, %c0_1] : memref<8x16xf32, #tpu.memory_space<vmem>>, vector<8x16xf32>
    %c0_2 = arith.constant 0 : index
    %c0_3 = arith.constant 0 : index
    %4 = vector.load %arg2[%c0_2, %c0_3] : memref<16x256xf32, #tpu.memory_space<vmem>>, vector<16x256xf32>
    %cst = arith.constant dense<0.000000e+00> : vector<8x256xf32>
    %5 = tpu.matmul %3, %4, %cst {dimension_numbers = #tpu.dot_dimension_numbers<[1], [0], [0], [1], [0, 0, 1, 1], [], []>} : vector<8x16xf32>, vector<16x256xf32>, vector<8x256xf32> -> vector<8x256xf32>
    %c0_4 = arith.constant 0 : index
    %c0_5 = arith.constant 0 : index
    %6 = vector.load %arg3[%c0_4, %c0_5] : memref<1x256xf32, #tpu.memory_space<vmem>>, vector<1x256xf32>
    %cst_6 = arith.constant dense<0.000000e+00> : vector<256xf32>
    %7 = vector.multi_reduction <add>, %5, %cst_6 [0] : vector<8x256xf32> to vector<256xf32>
    %8 = vector.shape_cast %7 : vector<256xf32> to vector<1x256xf32>
    %9 = arith.addf %6, %8 : vector<1x256xf32>
    %c0_7 = arith.constant 0 : index
    %c0_8 = arith.constant 0 : index
    %10 = vector.load %arg3[%c0_7, %c0_8] : memref<1x256xf32, #tpu.memory_space<vmem>>, vector<1x256xf32>
    tpu.vector_store %arg3[%c0_7, %c0_8], %9 {strides = array<i32>} : memref<1x256xf32, #tpu.memory_space<vmem>>, vector<1x256xf32>,
    %c0_9 = arith.constant 0 : index
    %c0_10 = arith.constant 0 : index
    %11 = vector.load %arg4[%c0_9, %c0_10] : memref<1x256xf32, #tpu.memory_space<vmem>>, vector<1x256xf32>
    %12 = arith.mulf %5, %5 : vector<8x256xf32>
    %cst_11 = arith.constant dense<0.000000e+00> : vector<256xf32>
    %13 = vector.multi_reduction <add>, %12, %cst_11 [0] : vector<8x256xf32> to vector<256xf32>
    %14 = vector.shape_cast %13 : vector<256xf32> to vector<1x256xf32>
    %15 = arith.addf %11, %14 : vector<1x256xf32>
    %c0_12 = arith.constant 0 : index
    %c0_13 = arith.constant 0 : index
    %16 = vector.load %arg4[%c0_12, %c0_13] : memref<1x256xf32, #tpu.memory_space<vmem>>, vector<1x256xf32>
    tpu.vector_store %arg4[%c0_12, %c0_13], %15 {strides = array<i32>} : memref<1x256xf32, #tpu.memory_space<vmem>>, vector<1x256xf32>,
    return
  }
  func.func @transform_0(%arg0: i32) -> (i32, i32) {
    %c0_i32 = arith.constant 0 : i32
    %c0_i32_0 = arith.constant 0 : i32
    return %arg0, %c0_i32 : i32, i32
  }
  func.func @transform_1(%arg0: i32) -> (i32, i32) {
    %c0_i32 = arith.constant 0 : i32
    %c0_i32_0 = arith.constant 0 : i32
    %c0_i32_1 = arith.constant 0 : i32
    return %c0_i32, %c0_i32_0 : i32, i32
  }
  func.func @transform_2(%arg0: i32) -> (i32, i32) {
    %c0_i32 = arith.constant 0 : i32
    %c0_i32_0 = arith.constant 0 : i32
    %c0_i32_1 = arith.constant 0 : i32
    return %c0_i32, %c0_i32_0 : i32, i32
  }
  func.func @transform_3(%arg0: i32) -> (i32, i32) {
    %c0_i32 = arith.constant 0 : i32
    %c0_i32_0 = arith.constant 0 : i32
    %c0_i32_1 = arith.constant 0 : i32
    return %c0_i32, %c0_i32_0 : i32, i32
  }
}

</mosaic_0001>

<bundles_post_ra>
// kernel: tpu_custom_call.1
= control target key start
LH: loop header
LB: loop body
LE: loop exit
PB: predicated region body
PF: predicated region fallthrough
CT: control target
= control target key end

     0   :  { %9 = vsyncpa [#allocation3], 0  ;;  %s850_s0 = inlined_call_operand.hbm [shape: f32[16,16], index: 0, kind: input, shape index: {}]   ;;  %s851_s1 = inlined_call_operand.hbm [shape: f32[16,256], index: 1, kind: input, shape index: {}]   ;;  %s852_s2 = inlined_call_operand.hbm [shape: f32[1,256], index: 2, kind: output, shape index: {0}]   ;;  %s853_s3 = inlined_call_operand.hbm [shape: f32[1,256], index: 3, kind: output, shape index: {1}]  }
   0x1   :  { %11 = vsyncpa [#allocation3 + $0x1], 0 }
   0x2   :  { %12 = vsyncpa [#allocation6], 0 }
   0x3   :  { %13 = vsyncpa [#allocation4], 0 }
   0x4   :  { %14 = vsyncpa [#allocation9], 0  ;;  %s704_s12 = smov 0   ;;  %s706_s13 = smov 0  }
   0x5   :  { %s708_s14 = smov 0   ;;  %s710_s15 = smov 0  }
   0x6 LB: > { %s723_s16 = sadd.s32 4294967295, %s673_s15   ;;  %p40_p0 = scmp.ne.s32.totalorder %s665_s13, %s661_s12  ;;  %s673_s15 = sphi %s710_s15, %s871_s15   ;;  %s669_s14 = sphi %s708_s14, %s870_s14   ;;  %s665_s13 = sphi %s706_s13, %s869_s13   ;;  %s661_s12 = sphi %s704_s12, %s868_s12  }
   0x7   : > { %p854_p1 = scmp.eq.s32.totalorder %s723_s16, 0  ;;  %p440_p2 = scmp.ge.s32.totalorder %s673_s15, 1 }
   0x8   : > { %p114_p3 = scmp.lt.s32.totalorder %s673_s15, 3  ;;  %s675_s19 = smov [#allocation5]  }
   0x9   : > { %p732_p5 = por %p854_p1, %p40_p0  ;;  %s126_s20 = sshll.u32 %s675_s19, 4  ;;  %s127_s20 = int_to_ptr.vmem [resolvable:$true] %s126_s20 }
   0xa   : > { %p736_p6 = pnand %p440_p2, %p114_p3  ;;  %s749_s22 = sadd.s32 1, %s673_s15  }
   0xb   : > { %s857_s17 = scalar_select %p732_p5, 1, 0 }
   0xc   : > { %s858_s18 = scalar_select %p736_p6, 1, 0 }
   0xd   : > { %p470_p7 = pneg %p736_p6  ;;  %s27_s23 = sadd.s32 1, %s669_s14 }
   0xe   : > { %s24_s24 = ssub.s32 %s673_s15, %s749_s22  ;;  %s536_s25 = scalar_lea.vmem %s127_s20, 512 }
   0xf   : > { %p744_p8 = pnand %p470_p7, %p854_p1  ;;  %p537_p10 = scmp.ne.s32.totalorder %s127_s20, %s536_s25 }
  0x10   : > { %p544_p13 = scmp.lt.s32.totalorder %s127_s20, %s127_s20  ;;  %p545_p0 = scmp.lt.s32.totalorder %s536_s25, %s536_s25 }
  0x11   : > { %p527_p9 = pneg %p744_p8 }
  0x12   : > { %p546_p2 = por %p545_p0, %p544_p13 }
  0x13   : > { %p539_p11 = pnand %p537_p10, %p527_p9 }
  0x15   : > { %p540_p12 = pneg %p539_p11 }
  0x17   : > { %p547_p3 = pnand %p546_p2, %p540_p12 }
  0x19   : > { %550 = shalt.err (!%p547_p3)
}
  0x1a   : > { %s676_s26 = smov 256   ;;  %s677_s27 = smov 16  }
  0x1b   : > { %473 = dma.hbm_to_vmem [thread:$0]  (!%p744_p8), %s851_s1, 512, %s127_s20, [#allocation6], %s676_s26, %s676_s26, %s677_s27  }
  0x1c   : > { %p25_p7 = scmp.eq.s32.totalorder %s24_s24, 0  ;;  %p34_p9 = scmp.ne.s32.totalorder %s669_s14, %s665_s13 }
  0x1d   : > { %p35_p10 = scmp.eq.s32.totalorder %s673_s15, 0  ;;  %p479_p11 = scmp.lt.s32.totalorder %s673_s15, 2 }
  0x1e   : > { %s766_s30 = scalar_select %p25_p7, %s669_s14, %s27_s23  }
  0x1f   : > { %p36_p12 = por %p35_p10, %p34_p9  ;;  %s140_s4 = sand.u32 1, %s669_s14  }
  0x20   : > { %s443_s5 = sshll.u32 %s140_s4, 3  ;;  %s444_s6 = sshll.u32 %s673_s15, 7 }
  0x21   : > { %s773_s9 = scalar_lea.hbm %s850_s0, %s444_s6  ;;  %s144_s10 = scalar_lea.vmem [#allocation2], %s443_s5 }
  0x22   : > { %s151_s11 = sshll.u32 %s144_s10, 4  ;;  %p775_p8 = pnand %p479_p11, %p36_p12  ;;  %s152_s11 = int_to_ptr.vmem [resolvable:$true] %s151_s11 }
  0x23   : > { %s141_s19 = scalar_lea.sflag [#allocation3], %s140_s4  ;;  %s551_s20 = scalar_lea.hbm %s773_s9, 128 }
  0x24   : > { %p552_p13 = scmp.ne.s32.totalorder %s773_s9, %s551_s20  ;;  %p553_p0 = pneg %p775_p8 }
  0x25   : > { %s556_s23 = scalar_lea.hbm %s850_s0, 256  ;;  %p557_p7 = scmp.lt.s32.totalorder %s773_s9, %s850_s0 }
  0x26   : > { %p554_p2 = pnand %p553_p0, %p552_p13  ;;  %p558_p9 = scmp.lt.s32.totalorder %s556_s23, %s551_s20 }
  0x28   : > { %p555_p3 = pneg %p554_p2  ;;  %p559_p10 = por %p558_p9, %p557_p7 }
  0x2a   : > { %p560_p11 = pnand %p559_p10, %p555_p3 }
  0x2c   : > { %563 = shalt.err (!%p560_p11)
}
  0x2d   : > { %s564_s26 = scalar_lea.vmem %s152_s11, 128  ;;  %s678_s27 = smov [#allocation2]  }
  0x2e   : > { %p565_p12 = scmp.ne.s32.totalorder %s152_s11, %s564_s26  ;;  %s569_s28 = sshll.u32 %s678_s27, 4  ;;  %s570_s28 = int_to_ptr.vmem [resolvable:$false] %s569_s28 }
  0x2f   : > { %s571_s29 = scalar_lea.vmem %s570_s28, 256  ;;  %p572_p13 = scmp.lt.s32.totalorder %s152_s11, %s570_s28 }
  0x30   : > { %p567_p4 = pnand %p565_p12, %p553_p0  ;;  %p573_p2 = scmp.lt.s32.totalorder %s571_s29, %s564_s26 }
  0x32   : > { %p568_p1 = pneg %p567_p4  ;;  %p574_p5 = por %p573_p2, %p572_p13 }
  0x34   : > { %p575_p6 = pnand %p574_p5, %p568_p1 }
  0x36   : > { %578 = shalt.err (!%p575_p6)
}
  0x37   : > { %477 = dma.hbm_to_vmem [thread:$0]  (!%p775_p8), %s773_s9, 128, %s152_s11, %s141_s19  }
  0x38   : > { %p861_p3 = scmp.ne.s32.totalorder %s858_s18, 0 }
  0x39   : > { %s162_s4 = sand.u32 (!%p861_p3), 1, %s665_s13   ;;  %p862_p4 = scmp.ne.s32.totalorder (!%p861_p3), %s857_s17, 0 }
  0x3a   : > { %160 = sbr.rel (%p861_p3) target bundleno = 316 (0x13c), region = 28  ;;  %s446_s5 = sshll.u32 (!%p861_p3), %s162_s4, 3 }
  0x3b   : > { %s163_s6 = scalar_lea.sflag (!%p861_p3), [#allocation3], %s162_s4  ;;  %s166_s7 = scalar_lea.vmem (!%p861_p3), [#allocation2], %s446_s5 }
  0x3f   : > { %644 = dma.done.wait (%p862_p4), %s163_s6, 128  }
  0x40   : > { %646 = vsyncadd (%p862_p4), %s163_s6, 4294967168  ;;  %p863_p1 = scmp.eq.s32.totalorder %s723_s16, 0 }
  0x42   : > { %648 = dma.done.wait (%p863_p1), [#allocation6], 512   ;;  %p864_p5 = pmov %p863_p1 }
  0x43   : > { %p865_p6 = scmp.ne.s32.totalorder %s723_s16, 0 }
  0x44   : > { %650 = vsyncadd (%p864_p5), [#allocation6], 4294966784 }
  0x45   : > { %191 = sbr.rel (%p865_p6) target bundleno = 78 (0x4e), region = 40 }
  0x4a   : > { %v192_v0 = vlaneseq  ;;  %v679_v1 = vmov 0.0  }
  0x4c   : > { %vm194_vm0 = vcmp.lt.s32.totalorder %v192_v0, 256 }
  0x4d   : > { %196 = vst.msk [vmem:[#allocation7] sm:$0x3] %vm194_vm0, %v679_v1  ;;  %197 = vst.msk [vmem:[#allocation8] sm:$0x3] %vm194_vm0, %v679_v1 }
  0x4e PF: > { %v202_v2 = vld [vmem:[#allocation5 + $0x18] sm:$0xff]  ;;  %v201_v3 = vld [vmem:[#allocation5 + $0x10] sm:$0xff]  ;;  %v200_v4 = vld [vmem:[#allocation5 + $0x8] sm:$0xff]  ;;  %v680_v6 = vmov 0.0   ;;  %vm203_vm1 = vcmask 130048   ;;  %v297_v18 = vlaneseq  ;;  %s682_s17 = smov [#allocation7]  }
  0x4f   : > { %235 = vmatprep.subr.mxu0 %v202_v2  ;;  %v199_v5 = vld [vmem:[#allocation5] sm:$0xff]  ;;  %271 = vmatprep.mubr.f32.mxu0 %v680_v6  ;;  %v198_v7 = vld [vmem:[%s166_s7] sm:$0xff]  ;;  %v681_v16 = vmov 1966171168   ;;  %s357_s18 = sshll.u32 %s682_s17, 4  ;;  %p481_p8 = scmp.eq.s32.totalorder %s723_s16, 1  ;;  %s358_s18 = int_to_ptr.vmem [resolvable:$true] %s357_s18 }
  0x50   : > { %236 = vmatpush1.msra.mxu0 %v201_v3  ;;  %v295_v17 = vunpack.c.l.s4 %v681_v16  ;;  %v298_v28 = vshrl.u32 %v297_v18, 7  ;;  %vm806_vm2 = vcmp.lt.s32.totalorder %v297_v18, 256  ;;  %s683_s8 = smov [#allocation8]   ;;  %s579_s10 = scalar_lea.vmem %s358_s18, 32 }
  0x51   : > { %237 = vmatprep.subr.mxu0 %v200_v4  ;;  %s368_s9 = sshll.u32 %s683_s8, 4  ;;  %p580_p0 = scmp.ne.s32.totalorder %s358_s18, %s579_s10  ;;  %s369_s9 = int_to_ptr.vmem [resolvable:$true] %s368_s9 }
  0x52   : > { %238 = vmatpush1.msra.mxu0 %v199_v5  ;;  %v296_v27 = vunpack.c.0.s8 %v295_v17  ;;  %p586_p10 = scmp.lt.s32.totalorder %s358_s18, %s358_s18  ;;  %p587_p11 = scmp.lt.s32.totalorder %s579_s10, %s579_s10 }
  0x53   : > { %449 = vmatmul.mubr.msk.f32.vlgmr.msra.gmra.mxu0 %vm203_vm1, %v198_v7  ;;  %p581_p7 = pnand %p580_p0, %p481_p8 }
  0x54   : > { %v299_v39 = vsub.s32 %v296_v27, %v298_v28  ;;  %v278_v45 = vld [vmem:[#allocation7] sm:$0x3]  ;;  %v315_v49 = vld [vmem:[#allocation8] sm:$0x3]  ;;  %p588_p12 = por %p587_p11, %p586_p10 }
  0x55   : > { %p582_p9 = pneg %p581_p7 }
  0x57   : > { %p589_p13 = pnand %p588_p12, %p582_p9 }
 0x113   : > { %v273_v8 = vpop.f32.mrf.mxu0 }
 0x114   : > { %v279_v9 = vrot.slane %v273_v8, 4  ;;  %v316_v10 = vmul.f32 %v273_v8, %v273_v8 }
 0x115   : > { %v275_v11 = vpop.f32.mrf.mxu0 }
 0x116   : > { %v280_v12 = vadd.f32 %v279_v9, %v273_v8  ;;  %v318_v13 = vrot.slane %v316_v10, 4  ;;  %v285_v14 = vrot.slane %v275_v11, 4  ;;  %v317_v15 = vmul.f32 %v275_v11, %v275_v11 }
 0x118   : > { %v281_v19 = vrot.slane %v280_v12, 2  ;;  %v319_v20 = vadd.f32 %v318_v13, %v316_v10  ;;  %v286_v21 = vadd.f32 %v285_v14, %v275_v11  ;;  %v324_v22 = vrot.slane %v317_v15, 4 }
 0x11a   : > { %v282_v23 = vadd.f32 %v281_v19, %v280_v12  ;;  %v320_v24 = vrot.slane %v319_v20, 2  ;;  %v287_v25 = vrot.slane %v286_v21, 2  ;;  %v325_v26 = vadd.f32 %v324_v22, %v317_v15 }
 0x11c   : > { %v283_v29 = vrot.slane %v282_v23, 1  ;;  %v321_v30 = vadd.f32 %v320_v24, %v319_v20  ;;  %v288_v31 = vadd.f32 %v287_v25, %v286_v21  ;;  %v326_v32 = vrot.slane %v325_v26, 2 }
 0x11e   : > { %v322_v33 = vrot.slane %v321_v30, 1  ;;  %v289_v34 = vrot.slane %v288_v31, 1  ;;  %v327_v35 = vadd.f32 %v326_v32, %v325_v26  ;;  %v284_v36 = vadd.f32 %v283_v29, %v282_v23 }
 0x120   : > { %v290_v37 = vadd.f32 %v289_v34, %v288_v31  ;;  %v328_v38 = vrot.slane %v327_v35, 1  ;;  %v323_v40 = vadd.f32 %v322_v33, %v321_v30 }
 0x122   : > { %v293_v41 = vcombine.low %v284_v36, %v290_v37  ;;  %v329_v42 = vadd.f32 %v328_v38, %v327_v35 }
 0x124   : > { %v332_v43 = vcombine.low %v323_v40, %v329_v42  ;;  %v300_v44 = vrot.slane %v293_v41, %v299_v39 }
 0x126   : > { %v307_v46 = vrot.slane %v300_v44, %v299_v39  ;;  %v339_v47 = vrot.slane %v332_v43, %v299_v39 }
 0x128   : > { %v309_v50 = vadd.f32 %v307_v46, %v278_v45  ;;  %v346_v51 = vrot.slane %v339_v47, %v299_v39 }
 0x12a   : > { %314 = vst.msk [vmem:[#allocation7] sm:$0x3] %vm806_vm2, %v309_v50  ;;  %v348_v52 = vadd.f32 %v346_v51, %v315_v49 }
 0x12b   : > { %592 = shalt.err (!%p589_p13)
}
 0x12c   : > { %463 = dma.vmem_to_hbm [thread:$0]  (%p481_p8), %s358_s18, 32, %s852_s2, [#allocation4]   ;;  %349 = vst.msk [vmem:[#allocation8] sm:$0x3] %vm806_vm2, %v348_v52 }
 0x12d   : > { %s603_s19 = scalar_lea.vmem %s369_s9, 32  ;;  %p610_p1 = scmp.lt.s32.totalorder %s369_s9, %s369_s9 }
 0x12e   : > { %p604_p2 = scmp.ne.s32.totalorder %s369_s9, %s603_s19  ;;  %p611_p5 = scmp.lt.s32.totalorder %s603_s19, %s603_s19 }
 0x130   : > { %p605_p3 = pnand %p604_p2, %p481_p8  ;;  %p612_p6 = por %p611_p5, %p610_p1 }
 0x132   : > { %p606_p4 = pneg %p605_p3 }
 0x134   : > { %p613_p0 = pnand %p612_p6, %p606_p4 }
 0x136   : > { %616 = shalt.err (!%p613_p0)
}
 0x137   : > { %465 = dma.vmem_to_hbm [thread:$0]  (%p481_p8), %s369_s9, 32, %s853_s3, [#allocation9]  }
 0x138   : > { %652 = dma.done.wait (%p481_p8), [#allocation4], 32  }
 0x139   : > { %654 = vsyncadd (%p481_p8), [#allocation4], 4294967264 }
 0x13a   : > { %656 = dma.done.wait (%p481_p8), [#allocation9], 32  }
 0x13b   : > { %658 = vsyncadd (%p481_p8), [#allocation9], 4294967264 }
 0x13c PF: > { %p17_p7 = scmp.ge.s32.totalorder %s749_s22, 4   ;;  %s868_s12 = smov %s665_s13 }
 0x13d   : > { %s869_s13 = smov %s669_s14  ;;  %s870_s14 = smov %s766_s30 }
 0x13e   : > { %s871_s15 = smov %s749_s22  ;;  %19 = sbr.rel (!%p17_p7) target bundleno = 6 (0x6), region = 81 }
 0x143   :  { %385 = vsyncpa [#allocation3], 1 }
 0x144   :  { %387 = vsyncpa [#allocation3 + $0x1], 1 }
 0x145   :  { %388 = vsyncpa [#allocation6], 1 }
 0x146   :  { %389 = vsyncpa [#allocation4], 1 }
 0x147   :  { %391 = vsyncpa [#allocation4 + $0x1], 1 }
 0x148   :  { %392 = vsyncpa [#allocation9], 1 }

</bundles_post_ra>
